<compile_context>
chip_gen: v7x
topology: tpu7x:2x2x1
jax: 0.10.0
libtpu: 0.0.40
codegen_flags: <defaults>
</compile_context>

<pallas_src>
import functools

import jax
import jax.numpy as jnp
from jax.experimental import pallas as pl
from jax.experimental.pallas import tpu as pltpu

_INV_SQRT2 = 0.7071067811865476


def _erf(x):
    # Abramowitz & Stegun 7.1.26 polynomial erf (max abs err ~1.5e-7).
    # Built only from primitives guaranteed to lower on Mosaic (exp on EUP,
    # add/mul/div/select on VPU), so exact-GELU semantics are preserved to
    # f32 noise without relying on a lax.erf lowering.
    a1, a2, a3, a4, a5 = (0.254829592, -0.284496736, 1.421413741,
                          -1.453152027, 1.061405429)
    p = 0.3275911
    ax = jnp.abs(x)
    t = 1.0 / (1.0 + p * ax)
    poly = ((((a5 * t + a4) * t + a3) * t + a2) * t + a1) * t
    y = 1.0 - poly * jnp.exp(-ax * ax)
    return jnp.where(x < 0, -y, y)


def _gelu_exact(x):
    # nn.GELU() default (approximate='none'): 0.5 * x * (1 + erf(x / sqrt(2)))
    return 0.5 * x * (1.0 + _erf(x * _INV_SQRT2))


def _mlp_kernel(x_ref, w1_ref, b1_ref, w2_ref, b2_ref, o_ref, acc_ref):
    # Grid: (row tiles [parallel], ffn tiles [arbitrary]).
    # The output block index is constant across the ffn axis, so o_ref/acc_ref
    # stay resident while the c_proj contraction is accumulated.
    j = pl.program_id(1)

    @pl.when(j == 0)
    def _():
        acc_ref[...] = jnp.zeros_like(acc_ref)

    x = x_ref[...]
    # c_fc partial: (tm, n_embd) @ (n_embd, tf) -> f32 on the MXU.
    h = jnp.dot(x, w1_ref[...], preferred_element_type=jnp.float32)
    h = h + b1_ref[...]                      # b1 pre-cast to f32 in the wrapper
    h = _gelu_exact(h)
    # c_proj partial: (tm, tf) @ (tf, n_embd), accumulated in f32 in VMEM.
    acc_ref[...] += jnp.dot(h.astype(w2_ref.dtype), w2_ref[...],
                            preferred_element_type=jnp.float32)

    @pl.when(j == pl.num_programs(1) - 1)
    def _():
        o_ref[...] = (acc_ref[...] + b2_ref[...]).astype(o_ref.dtype)
    # TODO(synk): training-mode dropout (pltpu.prng_seed + stateful_bernoulli mask)
    # is not implemented; eval-mode dropout is the identity, which is what we compute.


def _pick_tile(n, candidates):
    for t in candidates:
        if t <= n and n % t == 0:
            return t
    return None


@functools.partial(jax.jit, static_argnames=("max_row_tile", "max_ffn_tile"))
def mlp(x, w1, b1, w2, b2, *, max_row_tile=256, max_ffn_tile=512):
    """Fused MLP forward: gelu(x @ w1 + b1) @ w2 + b2 (dropout in eval = identity)."""
    orig_shape = x.shape
    n_embd = orig_shape[-1]
    ffn = w1.shape[-1]
    rows = 1
    for d in orig_shape[:-1]:
        rows *= d
    x2 = x.reshape(rows, n_embd)

    if b1 is None:
        b1 = jnp.zeros((ffn,), dtype=jnp.float32)
    if b2 is None:
        b2 = jnp.zeros((n_embd,), dtype=jnp.float32)
    # Hoist parameter casts out of the kernel: biases live in f32 (tiny arrays).
    b1 = b1.reshape(1, ffn).astype(jnp.float32)
    b2 = b2.reshape(1, n_embd).astype(jnp.float32)

    # Row tile: as large as evenly divides the row count (amortizes the ~0.35us
    # per-grid-step overhead). Only pad (rare, small) when rows isn't a multiple of 8.
    tm = _pick_tile(rows, (max_row_tile, 128, 64, 32, 16, 8))
    if tm is None:
        pad = (-rows) % 8
        x2 = jnp.pad(x2, ((0, pad), (0, 0)))
        tm = 8
    rows_p = x2.shape[0]

    # FFN tile: contraction axis of c_proj (grid axis 1, "arbitrary"). Lane-dense
    # multiples of 128 when possible, else the full (small) ffn dim.
    tf = _pick_tile(ffn, (max_ffn_tile, 256, 128)) or ffn

    dsize = jnp.dtype(x.dtype).itemsize
    cost = pl.CostEstimate(
        flops=4 * rows * n_embd * ffn + 10 * rows * ffn,
        transcendentals=rows * ffn,                       # one exp per GELU element
        bytes_accessed=(2 * rows * n_embd + 2 * n_embd * ffn) * dsize
        + (ffn + n_embd) * 4,
    )

    # VMEM budget: double-buffered in/out tiles + f32 accumulator. Only raise the
    # scoped limit above the default when the tiles actually need it (keeps the
    # same code safe on v7x's 64 MiB physical VMEM and v5e/v6e's 128 MiB).
    vmem_need = (
        2 * (tm * n_embd + n_embd * tf + tf + tf * n_embd + n_embd) * dsize
        + 2 * tm * n_embd * dsize
        + tm * n_embd * 4
    )
    vmem_limit = None
    if vmem_need > 28 * 1024 * 1024:
        vmem_limit = min(int(1.5 * vmem_need), 96 * 1024 * 1024)

    out = pl.pallas_call(
        _mlp_kernel,
        out_shape=jax.ShapeDtypeStruct((rows_p, n_embd), x.dtype),
        grid_spec=pltpu.PrefetchScalarGridSpec(
            num_scalar_prefetch=0,
            grid=(rows_p // tm, ffn // tf),
            in_specs=[
                pl.BlockSpec((tm, n_embd), lambda i, j: (i, 0)),   # x row tile
                pl.BlockSpec((n_embd, tf), lambda i, j: (0, j)),   # w1 column tile
                pl.BlockSpec((1, tf), lambda i, j: (0, j)),        # b1 tile
                pl.BlockSpec((tf, n_embd), lambda i, j: (j, 0)),   # w2 row tile
                pl.BlockSpec((1, n_embd), lambda i, j: (0, 0)),    # b2
            ],
            out_specs=pl.BlockSpec((tm, n_embd), lambda i, j: (i, 0)),
            scratch_shapes=[pltpu.VMEM((tm, n_embd), jnp.float32)],
        ),
        compiler_params=pltpu.CompilerParams(
            dimension_semantics=("parallel", "arbitrary"),
            vmem_limit_bytes=vmem_limit,
        ),
        cost_estimate=cost,
    )(x2, w1, b1, w2, b2)

    if rows_p != rows:
        out = out[:rows]
    return out.reshape(orig_shape)


if __name__ == "__main__":
    # Small transformer-style shapes: (batch, seq, n_embd); MLP hidden = 4*n_embd.
    batch, seq, n_embd = 2, 8, 32
    ffn = 4 * n_embd
    key = jax.random.PRNGKey(0)
    kx, k1, kb1, k2, kb2 = jax.random.split(key, 5)

    x = jax.random.normal(kx, (batch, seq, n_embd), dtype=jnp.float32)
    # Deterministic "nn.Linear"-style params (math layout, bias=True, dropout=0.0).
    w1 = jax.random.normal(k1, (n_embd, ffn), dtype=jnp.float32) / jnp.sqrt(n_embd)
    b1 = jax.random.normal(kb1, (ffn,), dtype=jnp.float32) * 0.02
    w2 = jax.random.normal(k2, (ffn, n_embd), dtype=jnp.float32) / jnp.sqrt(ffn)
    b2 = jax.random.normal(kb2, (n_embd,), dtype=jnp.float32) * 0.02

    y = mlp(x, w1, b1, w2, b2)
    jax.block_until_ready(y)

    # Reference: plain JAX, exact (erf) GELU, matching the PyTorch MLP forward.
    h_ref = jnp.dot(x, w1, precision=jax.lax.Precision.HIGHEST) + b1
    h_ref = jax.nn.gelu(h_ref, approximate=False)
    ref = jnp.dot(h_ref, w2, precision=jax.lax.Precision.HIGHEST) + b2

    assert y.shape == ref.shape
    assert jnp.allclose(y, ref, atol=1e-2, rtol=1e-2), "mismatch vs reference"

    print("KERNEL_OK")
</pallas_src>

<mosaic_0001>
module attributes {stable_mosaic.version = 11 : i64} {
  func.func @_mlp_kernel(%arg0: i32, %arg1: i32, %arg2: memref<16x32xf32, #tpu.memory_space<vmem>>, %arg3: memref<32x128xf32, #tpu.memory_space<vmem>>, %arg4: memref<1x128xf32, #tpu.memory_space<vmem>>, %arg5: memref<128x32xf32, #tpu.memory_space<vmem>>, %arg6: memref<1x32xf32, #tpu.memory_space<vmem>>, %arg7: memref<16x32xf32, #tpu.memory_space<vmem>>, %arg8: memref<16x32xf32, #tpu.memory_space<vmem>>) attributes {dimension_semantics = [#tpu.dimension_semantics<parallel>, #tpu.dimension_semantics<arbitrary>], iteration_bounds = array<i64: 1, 1>, scalar_prefetch = 0 : i64, scratch_operands = 1 : i64, tpu.core_type = #tpu.core_type<tc>, window_params = [{transform_indices = @transform_0, window_bounds = array<i64: 16, 32>}, {transform_indices = @transform_1, window_bounds = array<i64: 32, 128>}, {transform_indices = @transform_2, window_bounds = array<i64: 1, 128>}, {transform_indices = @transform_3, window_bounds = array<i64: 128, 32>}, {pipeline_mode = #tpu.pipeline_mode<synchronous>, transform_indices = @transform_4, window_bounds = array<i64: 1, 32>}, {transform_indices = @transform_5, window_bounds = array<i64: 16, 32>}]} {
    %c0_i32 = arith.constant 0 : i32
    %0 = arith.cmpi eq, %arg1, %c0_i32 : i32
    %1 = arith.extui %0 : i1 to i32
    %c0_i32_0 = arith.constant 0 : i32
    %2 = arith.cmpi ne, %1, %c0_i32_0 : i32
    scf.if %2 {
      %cst_30 = arith.constant 0.000000e+00 : f32
      %57 = vector.broadcast %cst_30 : f32 to vector<16x32xf32>
      %c0_31 = arith.constant 0 : index
      %c0_32 = arith.constant 0 : index
      %58 = vector.load %arg8[%c0_31, %c0_32] : memref<16x32xf32, #tpu.memory_space<vmem>>, vector<16x32xf32>
      tpu.vector_store %arg8[%c0_31, %c0_32], %57 {strides = array<i32>} : memref<16x32xf32, #tpu.memory_space<vmem>>, vector<16x32xf32>,
    } else {
    }
    %c0 = arith.constant 0 : index
    %c0_1 = arith.constant 0 : index
    %3 = vector.load %arg2[%c0, %c0_1] : memref<16x32xf32, #tpu.memory_space<vmem>>, vector<16x32xf32>
    %c0_2 = arith.constant 0 : index
    %c0_3 = arith.constant 0 : index
    %4 = vector.load %arg3[%c0_2, %c0_3] : memref<32x128xf32, #tpu.memory_space<vmem>>, vector<32x128xf32>
    %cst = arith.constant dense<0.000000e+00> : vector<16x128xf32>
    %5 = tpu.matmul %3, %4, %cst {dimension_numbers = #tpu.dot_dimension_numbers<[1], [0], [0], [1], [0, 0, 1, 1], [], []>} : vector<16x32xf32>, vector<32x128xf32>, vector<16x128xf32> -> vector<16x128xf32>
    %c0_4 = arith.constant 0 : index
    %c0_5 = arith.constant 0 : index
    %6 = vector.load %arg4[%c0_4, %c0_5] : memref<1x128xf32, #tpu.memory_space<vmem>>, vector<1x128xf32>
    %7 = vector.broadcast %6 : vector<1x128xf32> to vector<16x128xf32>
    %8 = arith.addf %5, %7 : vector<16x128xf32>
    %cst_6 = arith.constant 5.000000e-01 : f32
    %9 = vector.broadcast %cst_6 : f32 to vector<16x128xf32>
    %10 = arith.mulf %9, %8 : vector<16x128xf32>
    %cst_7 = arith.constant 0.707106769 : f32
    %11 = vector.broadcast %cst_7 : f32 to vector<16x128xf32>
    %12 = arith.mulf %8, %11 : vector<16x128xf32>
    %13 = math.absf %12 : vector<16x128xf32>
    %cst_8 = arith.constant 0.327591091 : f32
    %14 = vector.broadcast %cst_8 : f32 to vector<16x128xf32>
    %15 = arith.mulf %14, %13 : vector<16x128xf32>
    %cst_9 = arith.constant 1.000000e+00 : f32
    %16 = vector.broadcast %cst_9 : f32 to vector<16x128xf32>
    %17 = arith.addf %16, %15 : vector<16x128xf32>
    %cst_10 = arith.constant 1.000000e+00 : f32
    %18 = vector.broadcast %cst_10 : f32 to vector<16x128xf32>
    %19 = arith.divf %18, %17 : vector<16x128xf32>
    %cst_11 = arith.constant 1.06140542 : f32
    %20 = vector.broadcast %cst_11 : f32 to vector<16x128xf32>
    %21 = arith.mulf %20, %19 : vector<16x128xf32>
    %cst_12 = arith.constant -1.45315206 : f32
    %22 = vector.broadcast %cst_12 : f32 to vector<16x128xf32>
    %23 = arith.addf %21, %22 : vector<16x128xf32>
    %24 = arith.mulf %23, %19 : vector<16x128xf32>
    %cst_13 = arith.constant 1.42141378 : f32
    %25 = vector.broadcast %cst_13 : f32 to vector<16x128xf32>
    %26 = arith.addf %24, %25 : vector<16x128xf32>
    %27 = arith.mulf %26, %19 : vector<16x128xf32>
    %cst_14 = arith.constant -0.284496725 : f32
    %28 = vector.broadcast %cst_14 : f32 to vector<16x128xf32>
    %29 = arith.addf %27, %28 : vector<16x128xf32>
    %30 = arith.mulf %29, %19 : vector<16x128xf32>
    %cst_15 = arith.constant 0.254829586 : f32
    %31 = vector.broadcast %cst_15 : f32 to vector<16x128xf32>
    %32 = arith.addf %30, %31 : vector<16x128xf32>
    %33 = arith.mulf %32, %19 : vector<16x128xf32>
    %cst_16 = arith.constant 0.000000e+00 : f32
    %34 = vector.broadcast %cst_16 : f32 to vector<16x128xf32>
    %35 = arith.subf %34, %13 : vector<16x128xf32>
    %36 = arith.mulf %35, %13 : vector<16x128xf32>
    %37 = math.exp %36 : vector<16x128xf32>
    %38 = arith.mulf %33, %37 : vector<16x128xf32>
    %cst_17 = arith.constant 1.000000e+00 : f32
    %39 = vector.broadcast %cst_17 : f32 to vector<16x128xf32>
    %40 = arith.subf %39, %38 : vector<16x128xf32>
    %cst_18 = arith.constant 0.000000e+00 : f32
    %41 = vector.broadcast %cst_18 : f32 to vector<16x128xf32>
    %42 = arith.cmpf olt, %12, %41 : vector<16x128xf32>
    %cst_19 = arith.constant 0.000000e+00 : f32
    %43 = vector.broadcast %cst_19 : f32 to vector<16x128xf32>
    %44 = arith.subf %43, %40 : vector<16x128xf32>
    %45 = arith.select %42, %44, %40 : vector<16x128xi1>, vector<16x128xf32>
    %cst_20 = arith.constant 1.000000e+00 : f32
    %46 = vector.broadcast %cst_20 : f32 to vector<16x128xf32>
    %47 = arith.addf %46, %45 : vector<16x128xf32>
    %48 = arith.mulf %10, %47 : vector<16x128xf32>
    %c0_21 = arith.constant 0 : index
    %c0_22 = arith.constant 0 : index
    %49 = vector.load %arg8[%c0_21, %c0_22] : memref<16x32xf32, #tpu.memory_space<vmem>>, vector<16x32xf32>
    %c0_23 = arith.constant 0 : index
    %c0_24 = arith.constant 0 : index
    %50 = vector.load %arg5[%c0_23, %c0_24] : memref<128x32xf32, #tpu.memory_space<vmem>>, vector<128x32xf32>
    %cst_25 = arith.constant dense<0.000000e+00> : vector<16x32xf32>
    %51 = tpu.matmul %48, %50, %cst_25 {dimension_numbers = #tpu.dot_dimension_numbers<[1], [0], [0], [1], [0, 0, 1, 1], [], []>} : vector<16x128xf32>, vector<128x32xf32>, vector<16x32xf32> -> vector<16x32xf32>
    %52 = arith.addf %49, %51 : vector<16x32xf32>
    %c0_26 = arith.constant 0 : index
    %c0_27 = arith.constant 0 : index
    %53 = vector.load %arg8[%c0_26, %c0_27] : memref<16x32xf32, #tpu.memory_space<vmem>>, vector<16x32xf32>
    tpu.vector_store %arg8[%c0_26, %c0_27], %52 {strides = array<i32>} : memref<16x32xf32, #tpu.memory_space<vmem>>, vector<16x32xf32>,
    %c0_i32_28 = arith.constant 0 : i32
    %54 = arith.cmpi eq, %arg1, %c0_i32_28 : i32
    %55 = arith.extui %54 : i1 to i32
    %c0_i32_29 = arith.constant 0 : i32
    %56 = arith.cmpi ne, %55, %c0_i32_29 : i32
    scf.if %56 {
      %c0_30 = arith.constant 0 : index
      %c0_31 = arith.constant 0 : index
      %57 = vector.load %arg8[%c0_30, %c0_31] : memref<16x32xf32, #tpu.memory_space<vmem>>, vector<16x32xf32>
      %c0_32 = arith.constant 0 : index
      %c0_33 = arith.constant 0 : index
      %58 = vector.load %arg6[%c0_32, %c0_33] : memref<1x32xf32, #tpu.memory_space<vmem>>, vector<1x32xf32>
      %59 = vector.broadcast %58 : vector<1x32xf32> to vector<16x32xf32>
      %60 = arith.addf %57, %59 : vector<16x32xf32>
      %c0_34 = arith.constant 0 : index
      %c0_35 = arith.constant 0 : index
      %61 = vector.load %arg7[%c0_34, %c0_35] : memref<16x32xf32, #tpu.memory_space<vmem>>, vector<16x32xf32>
      tpu.vector_store %arg7[%c0_34, %c0_35], %60 {strides = array<i32>} : memref<16x32xf32, #tpu.memory_space<vmem>>, vector<16x32xf32>,
    } else {
    }
    return
  }
  func.func @transform_0(%arg0: i32, %arg1: i32) -> (i32, i32) {
    %c0_i32 = arith.constant 0 : i32
    %c0_i32_0 = arith.constant 0 : i32
    return %arg0, %c0_i32 : i32, i32
  }
  func.func @transform_1(%arg0: i32, %arg1: i32) -> (i32, i32) {
    %c0_i32 = arith.constant 0 : i32
    %c0_i32_0 = arith.constant 0 : i32
    return %c0_i32, %arg1 : i32, i32
  }
  func.func @transform_2(%arg0: i32, %arg1: i32) -> (i32, i32) {
    %c0_i32 = arith.constant 0 : i32
    %c0_i32_0 = arith.constant 0 : i32
    return %c0_i32, %arg1 : i32, i32
  }
  func.func @transform_3(%arg0: i32, %arg1: i32) -> (i32, i32) {
    %c0_i32 = arith.constant 0 : i32
    %c0_i32_0 = arith.constant 0 : i32
    return %arg1, %c0_i32 : i32, i32
  }
  func.func @transform_4(%arg0: i32, %arg1: i32) -> (i32, i32) {
    %c0_i32 = arith.constant 0 : i32
    %c0_i32_0 = arith.constant 0 : i32
    %c0_i32_1 = arith.constant 0 : i32
    return %c0_i32, %c0_i32_0 : i32, i32
  }
  func.func @transform_5(%arg0: i32, %arg1: i32) -> (i32, i32) {
    %c0_i32 = arith.constant 0 : i32
    %c0_i32_0 = arith.constant 0 : i32
    return %arg0, %c0_i32 : i32, i32
  }
}

</mosaic_0001>

<bundles_post_ra>
// kernel: mlp.1
= control target key start
LH: loop header
LB: loop body
LE: loop exit
PB: predicated region body
PF: predicated region fallthrough
CT: control target
= control target key end

     0   :  { %vm25_vm0 = vcmask 261120   ;;  %s582_s0 = inlined_call_operand.vmem [shape: f32[16,32], index: 0, kind: input, shape index: {}]   ;;  %s583_s1 = inlined_call_operand.vmem [shape: f32[32,128], index: 1, kind: input, shape index: {}]   ;;  %s584_s2 = inlined_call_operand.vmem [shape: f32[1,128], index: 2, kind: input, shape index: {}]   ;;  %s585_s3 = inlined_call_operand.vmem [shape: f32[128,32], index: 3, kind: input, shape index: {}]   ;;  %s586_s4 = inlined_call_operand.vmem [shape: f32[1,32], index: 4, kind: input, shape index: {}]   ;;  %s587_s5 = inlined_call_operand.hbm [shape: f32[16,32], index: 5, kind: output, shape index: {}]  }
   0x1   :  { %v30_v0 = vld [vmem:[%s583_s1] sm:$0xff]  ;;  %v31_v1 = vld [vmem:[%s583_s1 + $0x8] sm:$0xff]  ;;  %v32_v2 = vld [vmem:[%s583_s1 + $0x10] sm:$0xff] }
   0x2   :  { %v380_v3 = vpack.c.bf16 %v31_v1, %v30_v0  ;;  %v33_v4 = vld [vmem:[%s583_s1 + $0x18] sm:$0xff]  ;;  %v28_v5 = vld [vmem:[%s582_s0] sm:$0xff] }
   0x3   :  { %v384_v6 = vpack.c.bf16 %v33_v4, %v32_v2  ;;  %342 = vmatprep.mubr.msk.f32.mxu0 %vm25_vm0, %v28_v5 }
   0x4   :  { %10 = vsyncpa [#allocation4], 0  ;;  %381 = vmatprep.subr.bf16.mxu0 %v380_v3  ;;  %v29_v7 = vld [vmem:[%s582_s0 + $0x8] sm:$0xff]  ;;  %v179_v8 = vld [vmem:[%s585_s3] sm:$0xff]  ;;  %v456_v32 = vmov 0.0   ;;  %s457_s11 = smov [#allocation3]  }
   0x5   :  { %383 = vmatpush3.bf16.msra.mxu0 %v380_v3  ;;  %v180_v9 = vld [vmem:[%s585_s3 + $0x8] sm:$0xff]  ;;  %v181_v10 = vld [vmem:[%s585_s3 + $0x10] sm:$0xff]  ;;  %v182_v12 = vld [vmem:[%s585_s3 + $0x18] sm:$0xff]  ;;  %27 = vst.msk [vmem:[#allocation2 + $0x8] sm:$0xff] %vm25_vm0, %v456_v32  ;;  %s295_s0 = sshll.u32 %s457_s11, 4  ;;  %s296_s0 = int_to_ptr.vmem [resolvable:$true] %s295_s0 }
   0x6   :  { %385 = vmatprep.subr.bf16.mxu0 %v384_v6  ;;  %v388_v11 = vpack.c.bf16 %v180_v9, %v179_v8  ;;  %v392_v13 = vpack.c.bf16 %v182_v12, %v181_v10  ;;  %v183_v14 = vld [vmem:[%s585_s3 + $0x20] sm:$0xff]  ;;  %v184_v15 = vld [vmem:[%s585_s3 + $0x28] sm:$0xff]  ;;  %v185_v17 = vld [vmem:[%s585_s3 + $0x30] sm:$0xff]  ;;  %26 = vst.msk [vmem:[#allocation2] sm:$0xff] %vm25_vm0, %v456_v32  ;;  %s432_s12 = scalar_lea.vmem %s296_s0, 256  ;;  %p437_p1 = scmp.lt.s32.totalorder %s296_s0, %s296_s0 }
   0x7   :  { %v396_v16 = vpack.c.bf16 %v184_v15, %v183_v14  ;;  %v186_v18 = vld [vmem:[%s585_s3 + $0x38] sm:$0xff]  ;;  %v187_v20 = vld [vmem:[%s585_s3 + $0x40] sm:$0xff]  ;;  %v188_v21 = vld [vmem:[%s585_s3 + $0x48] sm:$0xff]  ;;  %p433_p0 = scmp.ne.s32.totalorder %s296_s0, %s432_s12  ;;  %p438_p2 = scmp.lt.s32.totalorder %s432_s12, %s432_s12 }
   0x8   :  { %389 = vmatprep.subr.bf16.mxu1 %v388_v11  ;;  %v400_v19 = vpack.c.bf16 %v186_v18, %v185_v17  ;;  %v404_v22 = vpack.c.bf16 %v188_v21, %v187_v20  ;;  %v189_v23 = vld [vmem:[%s585_s3 + $0x50] sm:$0xff]  ;;  %v190_v24 = vld [vmem:[%s585_s3 + $0x58] sm:$0xff]  ;;  %v191_v26 = vld [vmem:[%s585_s3 + $0x60] sm:$0xff] }
   0x9   :  { %387 = vmatpush3.bf16.msra.mxu0 %v384_v6  ;;  %391 = vmatpush3.bf16.msra.mxu1 %v388_v11  ;;  %v408_v25 = vpack.c.bf16 %v190_v24, %v189_v23  ;;  %v192_v27 = vld [vmem:[%s585_s3 + $0x68] sm:$0xff]  ;;  %v193_v29 = vld [vmem:[%s585_s3 + $0x70] sm:$0xff]  ;;  %v194_v30 = vld [vmem:[%s585_s3 + $0x78] sm:$0xff]  ;;  %p439_p3 = por %p438_p2, %p437_p1 }
   0xa   :  { %393 = vmatprep.subr.bf16.mxu1 %v392_v13  ;;  %v412_v28 = vpack.c.bf16 %v192_v27, %v191_v26  ;;  %v416_v31 = vpack.c.bf16 %v194_v30, %v193_v29  ;;  %v306_v33 = vld [vmem:[%s584_s2] ss:$0 sm:$0xff] }
   0xb   :  { %v309_v30 = vld [vmem:[%s586_s4] ss:$0 sm:$0xff]  ;;  %p440_p4 = pnand %p439_p3, %p433_p0 }
   0xc   :  { %343 = vmatmul.mubr.msk.f32.vlgmr.msra.gmra.mrb[0].mxu0 %vm25_vm0, %v29_v7  ;;  %v178_v24 = vld [vmem:[#allocation2 + $0x8] sm:$0xff] }
   0xd   :  { %395 = vmatpush3.bf16.msra.mxu1 %v392_v13 }
   0xe   :  { %397 = vmatprep.subr.bf16.mxu1 %v396_v16 }
  0x11   :  { %399 = vmatpush3.bf16.msra.mxu1 %v396_v16 }
  0x12   :  { %401 = vmatprep.subr.bf16.mxu1 %v400_v19 }
  0x15   :  { %403 = vmatpush3.bf16.msra.mxu1 %v400_v19 }
  0x16   :  { %405 = vmatprep.subr.bf16.mxu1 %v404_v22 }
  0x19   :  { %407 = vmatpush3.bf16.msra.mxu1 %v404_v22 }
  0x1a   :  { %409 = vmatprep.subr.bf16.mxu1 %v408_v25 }
  0x1d   :  { %411 = vmatpush3.bf16.msra.mxu1 %v408_v25  ;;  %v177_v25 = vld [vmem:[#allocation2] sm:$0xff] }
  0x1e   :  { %413 = vmatprep.subr.bf16.mxu1 %v412_v28 }
  0x21   :  { %415 = vmatpush3.bf16.msra.mxu1 %v412_v28 }
  0x22   :  { %417 = vmatprep.subr.bf16.mxu1 %v416_v31 }
  0x25   :  { %419 = vmatpush3.bf16.msra.mxu1 %v416_v31 }
  0xdf   :  { %v344_v34 = vpop.f32.mrb[0].mxu0 }
  0xe0   :  { %v120_v35 = vadd.f32 %v344_v34, %v306_v33  ;;  %v114_v36 = vpop.f32.mrb[1].mxu0 }
  0xe1   :  { %v115_v37 = vadd.f32 %v306_v33, %v114_v36 }
  0xe2   :  { %v126_v38 = vmul.f32 0.70710677, %v120_v35  ;;  %v124_v21 = vmul.f32 0.5, %v120_v35 }
  0xe3   :  { %v125_v39 = vmul.f32 0.70710677, %v115_v37  ;;  %v123_v19 = vmul.f32 0.5, %v115_v37 }
  0xe4   :  { %v128_v40 = vand.u32 2147483647, %v126_v38  ;;  %vm168_vm1 = vcmp.lt.f32.partialorder %v126_v38, 0.0 }
  0xe5   :  { %v127_v41 = vand.u32 2147483647, %v125_v39  ;;  %vm167_vm2 = vcmp.lt.f32.partialorder %v125_v39, 0.0 }
  0xe6   :  { %v130_v42 = vmul.f32 0.3275911, %v128_v40  ;;  %v156_v46 = vsub.f32 0.0, %v128_v40 }
  0xe7   :  { %v129_v43 = vmul.f32 0.3275911, %v127_v41  ;;  %v155_v47 = vsub.f32 0.0, %v127_v41 }
  0xe8   :  { %v132_v44 = vadd.f32 1.0, %v130_v42  ;;  %v158_v49 = vmul.f32 %v156_v46, %v128_v40 }
  0xe9   :  { %v131_v45 = vadd.f32 1.0, %v129_v43  ;;  %v157_v51 = vmul.f32 %v155_v47, %v127_v41 }
  0xea   :  { %424 = vrcp.f32 %v132_v44  ;;  %v161_v55 = vmul.f32 1.442695, %v158_v49 }
  0xeb   :  { %426 = vrcp.f32 %v131_v45  ;;  %v159_v57 = vmul.f32 1.442695, %v157_v51 }
  0xec   :  { %428 = vpow2.f32 %v161_v55 }
  0xed   :  { %430 = vpow2.f32 %v159_v57 }
  0xf4   :  { %v425_v48 = vpop.eup %424 }
  0xf5   :  { %v427_v50 = vpop.eup %426  ;;  %v138_v52 = vmul.f32 1.0614054, %v425_v48 }
  0xf6   :  { %v137_v53 = vmul.f32 1.0614054, %v427_v50  ;;  %v429_v7 = vpop.eup %428 }
  0xf7   :  { %v140_v54 = vadd.f32 -1.4531521, %v138_v52  ;;  %v431_v9 = vpop.eup %430 }
  0xf8   :  { %v139_v56 = vadd.f32 -1.4531521, %v137_v53 }
  0xf9   :  { %v142_v58 = vmul.f32 %v425_v48, %v140_v54 }
  0xfa   :  { %v141_v59 = vmul.f32 %v427_v50, %v139_v56 }
  0xfb   :  { %v144_v60 = vadd.f32 1.4214138, %v142_v58 }
  0xfc   :  { %v143_v61 = vadd.f32 1.4214138, %v141_v59 }
  0xfd   :  { %v146_v62 = vmul.f32 %v425_v48, %v144_v60 }
  0xfe   :  { %v145_v63 = vmul.f32 %v427_v50, %v143_v61 }
  0xff   :  { %v148_v0 = vadd.f32 -0.28449672, %v146_v62 }
 0x100   :  { %v147_v1 = vadd.f32 -0.28449672, %v145_v63 }
 0x101   :  { %v150_v2 = vmul.f32 %v425_v48, %v148_v0 }
 0x102   :  { %v149_v3 = vmul.f32 %v427_v50, %v147_v1 }
 0x103   :  { %v152_v4 = vadd.f32 0.2548296, %v150_v2 }
 0x104   :  { %v151_v5 = vadd.f32 0.2548296, %v149_v3 }
 0x105   :  { %v154_v6 = vmul.f32 %v425_v48, %v152_v4 }
 0x106   :  { %v153_v8 = vmul.f32 %v427_v50, %v151_v5 }
 0x107   :  { %v164_v10 = vmul.f32 %v429_v7, %v154_v6 }
 0x108   :  { %v163_v11 = vmul.f32 %v431_v9, %v153_v8 }
 0x109   :  { %v166_v12 = vsub.f32 1.0, %v164_v10 }
 0x10a   :  { %v165_v13 = vsub.f32 1.0, %v163_v11 }
 0x10b   :  { %v170_v14 = vsub.f32 0.0, %v166_v12 }
 0x10c   :  { %v169_v15 = vsub.f32 0.0, %v165_v13 }
 0x10d   :  { %v172_v16 = vsel %vm168_vm1, %v170_v14, %v166_v12 }
 0x10e   :  { %v171_v17 = vsel %vm167_vm2, %v169_v15, %v165_v13  ;;  %v174_v18 = vadd.f32 1.0, %v172_v16 }
 0x10f   :  { %v173_v20 = vadd.f32 1.0, %v171_v17 }
 0x110   :  { %v176_v23 = vmul.f32 %v174_v18, %v124_v21 }
 0x111   :  { %v175_v22 = vmul.f32 %v173_v20, %v123_v19 }
 0x113   :  { %377 = vmatprep.mubr.f32.mxu1 %v175_v22 }
 0x114   :  { %378 = vmatmul.mubr.f32.vlgmr.msra.gmra.mrb[0].mxu1 %v176_v23 }
 0x1e7   :  { %v379_v26 = vpop.f32.mrb[0].mxu1 }
 0x1e8   :  { %v271_v27 = vadd.f32 %v379_v26, %v178_v24  ;;  %v261_v28 = vpop.f32.mrb[1].mxu1 }
 0x1e9   :  { %v270_v29 = vadd.f32 %v261_v28, %v177_v25 }
 0x1ea   :  { %273 = vst.msk [vmem:[#allocation2 + $0x8] sm:$0xff] %vm25_vm0, %v271_v27 }
 0x1eb   :  { %272 = vst.msk [vmem:[#allocation2] sm:$0xff] %vm25_vm0, %v270_v29 }
 0x1f1   :  { %v278_v31 = vld [vmem:[#allocation2 + $0x8] sm:$0xff] }
 0x1f2   :  { %v277_v32 = vld [vmem:[#allocation2] sm:$0xff]  ;;  %v287_v33 = vadd.f32 %v309_v30, %v278_v31 }
 0x1f3   :  { %v286_v34 = vadd.f32 %v309_v30, %v277_v32 }
 0x1f4   :  { %289 = vst.msk [vmem:[#allocation3 + $0x8] sm:$0xff] %vm25_vm0, %v287_v33 }
 0x1f5   :  { %288 = vst.msk [vmem:[#allocation3] sm:$0xff] %vm25_vm0, %v286_v34 }
 0x1f6   :  { %443 = shalt.err (!%p440_p4)
}
 0x1f7   :  { %s444_s14 = scalar_lea.hbm %s587_s5, 256 }
 0x1f8   :  { %p445_p5 = scmp.ne.s32.totalorder %s587_s5, %s444_s14  ;;  %p448_p6 = scmp.lt.u32.totalorder %s444_s14, %s587_s5 }
 0x1fa   :  { %p450_p7 = pnand %p448_p6, %p445_p5 }
 0x1fc   :  { %453 = shalt.err (!%p450_p7)
}
 0x1fd   :  { %s458_s19 = smov 128   ;;  %s459_s20 = smov 8  }
 0x1fe   :  { %301 = dma.vmem_to_hbm [thread:$0]  %s296_s0, 256, %s587_s5, [#allocation4], %s458_s19, %s458_s19, %s459_s20  }
 0x1ff   :  { %454 = dma.done.wait [#allocation4], 256  }
 0x200   :  { %455 = vsyncadd [#allocation4], 4294967040 }
 0x201   :  { %305 = vsyncpa [#allocation4], 1 }

</bundles_post_ra>
